<compile_context>
chip_gen: v5e
topology: v5e:2x2
jax: 0.10.0
libtpu: 0.0.40
codegen_flags: <defaults>
</compile_context>

<pallas_src>
import functools

import jax
import jax.numpy as jnp
from jax.experimental import pallas as pl
from jax.experimental.pallas import tpu as pltpu


_WORKING_SET_BUDGET = 30 * 1024 * 1024   # target per-step VMEM working set
_VMEM_LIMIT_BYTES = 48 * 1024 * 1024     # explicit scoped-VMEM limit (all chips)
_F32_TEMP_COPIES = 3                     # ~live full-width f32 temporaries
_MAX_TILE_N = 1024
_MIN_FUSED_TILE_N = 128                  # don't fuse heads below this tile size


def _per_row_bytes(preds):
    """VMEM bytes needed per batch row for a fused group of logits tensors."""
    stream = sum(2 * p.shape[1] * jnp.dtype(p.dtype).itemsize for p in preds)
    interm = _F32_TEMP_COPIES * 4 * max(p.shape[1] for p in preds)
    return max(1, stream + interm)


def _choose_tile_n(n, per_row_bytes):
    """Largest multiple-of-8 batch tile fitting the VMEM budget; if the whole
    batch fits in one tile, split it in two so a ('parallel',) grid can use
    both TensorCores on v7x."""
    rows = _WORKING_SET_BUDGET // per_row_bytes
    rows = max(8, min(_MAX_TILE_N, (rows // 8) * 8))
    if rows >= n:
        if n > 8:
            rows = max(8, (((n + 1) // 2) + 7) // 8 * 8)   # >= 2 tiles
        else:
            rows = 8
    return rows


def _group_outputs(outputs, n):
    """Greedily fuse consecutive heads into one pallas_call as long as the
    fused VMEM working set still allows a reasonably large batch tile."""
    min_rows = min(_MIN_FUSED_TILE_N, ((n + 7) // 8) * 8)
    groups, cur = [], []
    for pred in outputs:
        cand = cur + [pred]
        rows = _WORKING_SET_BUDGET // _per_row_bytes(cand)
        if cur and rows < min_rows:
            groups.append(cur)
            cur = [pred]
        else:
            cur = cand
    if cur:
        groups.append(cur)
    return groups


def _make_ce_kernel(num_logits, n_valid, tile_n, needs_mask):
    """Kernel over one batch tile for `num_logits` fused logits tensors.

    Inputs : target (TILE_N, 1) int32, then num_logits blocks (TILE_N, C_l).
    Output : (1, 8, 128) f32 block; every element holds this tile's partial
             sum of (lse - logits[target]) summed over the fused heads.
    """
    def kernel(tgt_ref, *refs):
        logit_refs = refs[:num_logits]
        out_ref = refs[num_logits]

        tgt = tgt_ref[...]                                          # (TN, 1) i32
        per_sample = jnp.zeros((tile_n, 1), jnp.float32)

        for lref in logit_refs:
            x = lref[...]                                           # (TN, C) native dtype
            c = x.shape[-1]
            # Numerically stable logsumexp over the class (lane) axis.
            # max / one-hot select / subtract stay in the native dtype (exact
            # for the select, cheap for bf16); cast to f32 only inside exp.
            m = jnp.max(x, axis=-1, keepdims=True)                  # (TN, 1)
            e = jnp.exp((x - m).astype(jnp.float32))                # (TN, C) f32
            lse = m.astype(jnp.float32) + jnp.log(
                jnp.sum(e, axis=-1, keepdims=True))                 # (TN, 1) f32
            # logits[n, target[n]] without a gather: one-hot select via iota.
            col = jax.lax.broadcasted_iota(jnp.int32, (tile_n, c), 1)
            picked = jnp.sum(jnp.where(col == tgt, x, jnp.zeros_like(x)),
                             axis=-1, keepdims=True).astype(jnp.float32)
            per_sample = per_sample + (lse - picked)

        if needs_mask:
            # Partial last block: rows past N hold stale VMEM garbage (possibly
            # NaN) -- jnp.where *selects*, so they are replaced by exact zeros.
            row = (pl.program_id(0) * tile_n
                   + jax.lax.broadcasted_iota(jnp.int32, (tile_n, 1), 0))
            per_sample = jnp.where(row < n_valid, per_sample, 0.0)

        tile_sum = jnp.sum(per_sample)                              # scalar
        out_ref[...] = jnp.broadcast_to(tile_sum, out_ref.shape)    # lane-dense

    return kernel


def _group_ce_sum(logits_list, tgt2d, n, tile_n):
    """Sum over the group of sum-over-batch cross-entropy (no 1/N yet)."""
    num_tiles = -(-n // tile_n)
    needs_mask = (n % tile_n) != 0
    kernel = _make_ce_kernel(len(logits_list), n, tile_n, needs_mask)

    in_specs = [pl.BlockSpec((tile_n, 1), lambda i: (i, 0))]        # target
    for p in logits_list:
        in_specs.append(pl.BlockSpec((tile_n, p.shape[1]), lambda i: (i, 0)))

    logits_bytes = sum(n * p.shape[1] * jnp.dtype(p.dtype).itemsize
                       for p in logits_list)
    cost = pl.CostEstimate(
        flops=int(sum(7 * n * p.shape[1] for p in logits_list)),
        transcendentals=int(sum(n * p.shape[1] for p in logits_list)),
        bytes_accessed=int(logits_bytes + n * 4 + num_tiles * 8 * 128 * 4))

    out = pl.pallas_call(
        kernel,
        out_shape=jax.ShapeDtypeStruct((num_tiles, 8, 128), jnp.float32),
        grid_spec=pltpu.PrefetchScalarGridSpec(
            num_scalar_prefetch=0,
            grid=(num_tiles,),
            in_specs=in_specs,
            out_specs=pl.BlockSpec((1, 8, 128), lambda i: (i, 0, 0)),
        ),
        compiler_params=pltpu.CompilerParams(
            dimension_semantics=("parallel",),       # independent batch tiles
            vmem_limit_bytes=_VMEM_LIMIT_BYTES),
        cost_estimate=cost,
    )(tgt2d, *logits_list)

    # Every element of a tile's (8,128) block equals its partial sum; read one.
    return jnp.sum(out[:, 0, 0])


def cross_entropy_multiple_output_single_target(outputs, target, tile_n=None):
    """outputs: list of (N, C_l) float arrays; target: (N,) integer class ids.

    Returns a scalar float32: sum over the list of mean cross-entropy losses.
    Note: out-of-range targets silently contribute logsumexp (no error raised).
    """
    assert isinstance(outputs, (list, tuple)) and len(outputs) > 0
    n = outputs[0].shape[0]
    for p in outputs:
        assert p.ndim == 2 and p.shape[0] == n
    assert target.shape == (n,)

    tgt2d = target.astype(jnp.int32).reshape(n, 1)
    inv_n = 1.0 / n

    total = jnp.float32(0.0)
    for group in _group_outputs(outputs, n):
        tn = tile_n if tile_n is not None else _choose_tile_n(
            n, _per_row_bytes(group))
        assert tn % 8 == 0, "tile_n must be a multiple of 8"
        total = total + _group_ce_sum(group, tgt2d, n, tn) * inv_n
    return total


def _reference_loss(outputs, target):
    """Pure-JAX reference (matches torch.nn.CrossEntropyLoss, mean reduction)."""
    total = jnp.float32(0.0)
    for pred in outputs:
        pred = pred.astype(jnp.float32)
        lse = jax.scipy.special.logsumexp(pred, axis=-1)
        picked = jnp.take_along_axis(
            pred, target[:, None].astype(jnp.int32), axis=-1)[:, 0]
        total = total + jnp.mean(lse - picked)
    return total


if __name__ == "__main__":
    key = jax.random.PRNGKey(0)

    #        name                 N   heads [(C, dtype), ...]              tile  tol
    cases = [
        ("small_f32",             8, [(16, jnp.float32)] * 3,              None, 1e-5),
        ("nonaligned_dims_f32",  12, [(130, jnp.float32)] * 2,             None, 1e-5),
        ("tiled_partial_f32",    20, [(160, jnp.float32)] * 2,             8,    1e-5),
        ("bf16_inputs",          16, [(64, jnp.bfloat16)] * 2,             None, 2e-2),
        ("mixed_heads",          16, [(96, jnp.float32), (160, jnp.float32),
                                      (64, jnp.bfloat16)],                 None, 2e-2),
    ]

    for idx, (name, n, heads, tn, tol) in enumerate(cases):
        keys = jax.random.split(jax.random.fold_in(key, idx), len(heads) + 1)
        outputs = [
            jax.random.normal(keys[i], (n, c), dtype=jnp.float32).astype(dt)
            for i, (c, dt) in enumerate(heads)
        ]
        c_min = min(c for c, _ in heads)
        target = jax.random.randint(keys[len(heads)], (n,), 0, c_min,
                                    dtype=jnp.int32)

        loss = jax.block_until_ready(
            cross_entropy_multiple_output_single_target(outputs, target, tile_n=tn))
        ref = jax.block_until_ready(_reference_loss(outputs, target))
        assert jnp.allclose(loss, ref, rtol=tol, atol=tol), (
            name, float(loss), float(ref))

    print("KERNEL_OK")
</pallas_src>

<mosaic_0001>
module attributes {stable_mosaic.version = 11 : i64} {
  func.func @kernel(%arg0: i32, %arg1: memref<8x1xi32, #tpu.memory_space<vmem>>, %arg2: memref<8x16xf32, #tpu.memory_space<vmem>>, %arg3: memref<8x16xf32, #tpu.memory_space<vmem>>, %arg4: memref<8x16xf32, #tpu.memory_space<vmem>>, %arg5: memref<1x8x128xf32, #tpu.memory_space<vmem>>) attributes {dimension_semantics = [#tpu.dimension_semantics<parallel>], iteration_bounds = array<i64: 1>, scalar_prefetch = 0 : i64, scratch_operands = 0 : i64, tpu.core_type = #tpu.core_type<tc>, window_params = [{transform_indices = @transform_0, window_bounds = array<i64: 8, 1>}, {transform_indices = @transform_1, window_bounds = array<i64: 8, 16>}, {transform_indices = @transform_2, window_bounds = array<i64: 8, 16>}, {transform_indices = @transform_3, window_bounds = array<i64: 8, 16>}, {transform_indices = @transform_4, window_bounds = array<i64: 1, 8, 128>}]} {
    %c0 = arith.constant 0 : index
    %c0_0 = arith.constant 0 : index
    %0 = vector.load %arg1[%c0, %c0_0] : memref<8x1xi32, #tpu.memory_space<vmem>>, vector<8x1xi32>
    %cst = arith.constant 0.000000e+00 : f32
    %1 = vector.broadcast %cst : f32 to vector<8x1xf32>
    %c0_1 = arith.constant 0 : index
    %c0_2 = arith.constant 0 : index
    %2 = vector.load %arg2[%c0_1, %c0_2] : memref<8x16xf32, #tpu.memory_space<vmem>>, vector<8x16xf32>
    %cst_3 = arith.constant dense<0xFF800000> : vector<8xf32>
    %3 = vector.multi_reduction <maximumf>, %2, %cst_3 [1] : vector<8x16xf32> to vector<8xf32>
    %4 = vector.shape_cast %3 : vector<8xf32> to vector<8x1xf32>
    %5 = vector.broadcast %4 : vector<8x1xf32> to vector<8x16xf32>
    %6 = arith.subf %2, %5 : vector<8x16xf32>
    %7 = math.exp %6 : vector<8x16xf32>
    %cst_4 = arith.constant dense<0.000000e+00> : vector<8xf32>
    %8 = vector.multi_reduction <add>, %7, %cst_4 [1] : vector<8x16xf32> to vector<8xf32>
    %9 = vector.shape_cast %8 : vector<8xf32> to vector<8x1xf32>
    %10 = math.log %9 : vector<8x1xf32>
    %11 = arith.addf %4, %10 : vector<8x1xf32>
    %12 = tpu.iota {dimensions = array<i32: 1>} : vector<8x16xi32>
    %13 = vector.broadcast %0 : vector<8x1xi32> to vector<8x16xi32>
    %14 = arith.cmpi eq, %12, %13 : vector<8x16xi32>
    %cst_5 = arith.constant 0.000000e+00 : f32
    %15 = vector.broadcast %cst_5 : f32 to vector<8x16xf32>
    %16 = arith.select %14, %2, %15 : vector<8x16xi1>, vector<8x16xf32>
    %cst_6 = arith.constant dense<0.000000e+00> : vector<8xf32>
    %17 = vector.multi_reduction <add>, %16, %cst_6 [1] : vector<8x16xf32> to vector<8xf32>
    %18 = vector.shape_cast %17 : vector<8xf32> to vector<8x1xf32>
    %19 = arith.subf %11, %18 : vector<8x1xf32>
    %20 = arith.addf %1, %19 : vector<8x1xf32>
    %c0_7 = arith.constant 0 : index
    %c0_8 = arith.constant 0 : index
    %21 = vector.load %arg3[%c0_7, %c0_8] : memref<8x16xf32, #tpu.memory_space<vmem>>, vector<8x16xf32>
    %cst_9 = arith.constant dense<0xFF800000> : vector<8xf32>
    %22 = vector.multi_reduction <maximumf>, %21, %cst_9 [1] : vector<8x16xf32> to vector<8xf32>
    %23 = vector.shape_cast %22 : vector<8xf32> to vector<8x1xf32>
    %24 = vector.broadcast %23 : vector<8x1xf32> to vector<8x16xf32>
    %25 = arith.subf %21, %24 : vector<8x16xf32>
    %26 = math.exp %25 : vector<8x16xf32>
    %cst_10 = arith.constant dense<0.000000e+00> : vector<8xf32>
    %27 = vector.multi_reduction <add>, %26, %cst_10 [1] : vector<8x16xf32> to vector<8xf32>
    %28 = vector.shape_cast %27 : vector<8xf32> to vector<8x1xf32>
    %29 = math.log %28 : vector<8x1xf32>
    %30 = arith.addf %23, %29 : vector<8x1xf32>
    %31 = tpu.iota {dimensions = array<i32: 1>} : vector<8x16xi32>
    %32 = vector.broadcast %0 : vector<8x1xi32> to vector<8x16xi32>
    %33 = arith.cmpi eq, %31, %32 : vector<8x16xi32>
    %cst_11 = arith.constant 0.000000e+00 : f32
    %34 = vector.broadcast %cst_11 : f32 to vector<8x16xf32>
    %35 = arith.select %33, %21, %34 : vector<8x16xi1>, vector<8x16xf32>
    %cst_12 = arith.constant dense<0.000000e+00> : vector<8xf32>
    %36 = vector.multi_reduction <add>, %35, %cst_12 [1] : vector<8x16xf32> to vector<8xf32>
    %37 = vector.shape_cast %36 : vector<8xf32> to vector<8x1xf32>
    %38 = arith.subf %30, %37 : vector<8x1xf32>
    %39 = arith.addf %20, %38 : vector<8x1xf32>
    %c0_13 = arith.constant 0 : index
    %c0_14 = arith.constant 0 : index
    %40 = vector.load %arg4[%c0_13, %c0_14] : memref<8x16xf32, #tpu.memory_space<vmem>>, vector<8x16xf32>
    %cst_15 = arith.constant dense<0xFF800000> : vector<8xf32>
    %41 = vector.multi_reduction <maximumf>, %40, %cst_15 [1] : vector<8x16xf32> to vector<8xf32>
    %42 = vector.shape_cast %41 : vector<8xf32> to vector<8x1xf32>
    %43 = vector.broadcast %42 : vector<8x1xf32> to vector<8x16xf32>
    %44 = arith.subf %40, %43 : vector<8x16xf32>
    %45 = math.exp %44 : vector<8x16xf32>
    %cst_16 = arith.constant dense<0.000000e+00> : vector<8xf32>
    %46 = vector.multi_reduction <add>, %45, %cst_16 [1] : vector<8x16xf32> to vector<8xf32>
    %47 = vector.shape_cast %46 : vector<8xf32> to vector<8x1xf32>
    %48 = math.log %47 : vector<8x1xf32>
    %49 = arith.addf %42, %48 : vector<8x1xf32>
    %50 = tpu.iota {dimensions = array<i32: 1>} : vector<8x16xi32>
    %51 = vector.broadcast %0 : vector<8x1xi32> to vector<8x16xi32>
    %52 = arith.cmpi eq, %50, %51 : vector<8x16xi32>
    %cst_17 = arith.constant 0.000000e+00 : f32
    %53 = vector.broadcast %cst_17 : f32 to vector<8x16xf32>
    %54 = arith.select %52, %40, %53 : vector<8x16xi1>, vector<8x16xf32>
    %cst_18 = arith.constant dense<0.000000e+00> : vector<8xf32>
    %55 = vector.multi_reduction <add>, %54, %cst_18 [1] : vector<8x16xf32> to vector<8xf32>
    %56 = vector.shape_cast %55 : vector<8xf32> to vector<8x1xf32>
    %57 = arith.subf %49, %56 : vector<8x1xf32>
    %58 = arith.addf %39, %57 : vector<8x1xf32>
    %59 = vector.shape_cast %58 : vector<8x1xf32> to vector<1x8x1xf32>
    %cst_19 = arith.constant dense<0.000000e+00> : vector<1xf32>
    %60 = vector.multi_reduction <add>, %59, %cst_19 [1, 2] : vector<1x8x1xf32> to vector<1xf32>
    %61 = vector.shape_cast %60 : vector<1xf32> to vector<1x1x1xf32>
    %62 = vector.extract %61[0, 0, 0] : f32 from vector<1x1x1xf32>
    %63 = vector.broadcast %62 : f32 to vector<1x8x128xf32>
    %c0_20 = arith.constant 0 : index
    %c0_21 = arith.constant 0 : index
    %c0_22 = arith.constant 0 : index
    %64 = vector.load %arg5[%c0_20, %c0_21, %c0_22] : memref<1x8x128xf32, #tpu.memory_space<vmem>>, vector<1x8x128xf32>
    tpu.vector_store %arg5[%c0_20, %c0_21, %c0_22], %63 {strides = array<i32>} : memref<1x8x128xf32, #tpu.memory_space<vmem>>, vector<1x8x128xf32>,
    return
  }
  func.func @transform_0(%arg0: i32) -> (i32, i32) {
    %c0_i32 = arith.constant 0 : i32
    %c0_i32_0 = arith.constant 0 : i32
    return %arg0, %c0_i32 : i32, i32
  }
  func.func @transform_1(%arg0: i32) -> (i32, i32) {
    %c0_i32 = arith.constant 0 : i32
    %c0_i32_0 = arith.constant 0 : i32
    return %arg0, %c0_i32 : i32, i32
  }
  func.func @transform_2(%arg0: i32) -> (i32, i32) {
    %c0_i32 = arith.constant 0 : i32
    %c0_i32_0 = arith.constant 0 : i32
    return %arg0, %c0_i32 : i32, i32
  }
  func.func @transform_3(%arg0: i32) -> (i32, i32) {
    %c0_i32 = arith.constant 0 : i32
    %c0_i32_0 = arith.constant 0 : i32
    return %arg0, %c0_i32 : i32, i32
  }
  func.func @transform_4(%arg0: i32) -> (i32, i32, i32) {
    %c0_i32 = arith.constant 0 : i32
    %c0_i32_0 = arith.constant 0 : i32
    %c0_i32_1 = arith.constant 0 : i32
    return %arg0, %c0_i32, %c0_i32_0 : i32, i32, i32
  }
}

</mosaic_0001>

<bundles_post_ra>
// kernel: tpu_custom_call.1
= control target key start
LH: loop header
LB: loop body
LE: loop exit
PB: predicated region body
PF: predicated region fallthrough
CT: control target
= control target key end

     0   :  { %9 = vsyncpa [#allocation3], 0  ;;  %s293_s0 = inlined_call_operand.vmem [shape: s32[8,1], index: 0, kind: input, shape index: {}]   ;;  %s294_s1 = inlined_call_operand.vmem [shape: f32[8,16], index: 1, kind: input, shape index: {}]   ;;  %s295_s2 = inlined_call_operand.hbm [shape: f32[8,16], index: 2, kind: input, shape index: {}]   ;;  %s296_s3 = inlined_call_operand.hbm [shape: f32[8,16], index: 3, kind: input, shape index: {}]   ;;  %s297_s4 = inlined_call_operand.hbm [shape: f32[1,8,128], index: 4, kind: output, shape index: {}]  }
   0x1   :  { %10 = vsyncpa [#allocation6], 0 }
   0x2   :  { %11 = vsyncpa [#allocation4], 0  ;;  %s21_s17 = sshll.u32 %s295_s2, 4  ;;  %s240_s18 = smov [#allocation2]   ;;  %s22_s17 = int_to_ptr.hbm [resolvable:$true] %s21_s17 }
   0x3   :  { %s23_s19 = sshll.u32 %s240_s18, 4  ;;  %s32_s22 = sshll.u32 %s296_s3, 4  ;;  %s24_s19 = int_to_ptr.vmem [resolvable:$true] %s23_s19  ;;  %s33_s22 = int_to_ptr.hbm [resolvable:$true] %s32_s22 }
   0x4   :  { %26 = dma.hbm_to_vmem [thread:$0]  %s22_s17, 128, %s24_s19, [#allocation3]  }
   0x5   :  { %s241_s23 = smov [#allocation5]  }
   0x6   :  { %s34_s24 = sshll.u32 %s241_s23, 4  ;;  %s35_s24 = int_to_ptr.vmem [resolvable:$true] %s34_s24 }
   0x7   :  { %37 = dma.hbm_to_vmem [thread:$0]  %s33_s22, 128, %s35_s24, [#allocation6]  }
   0x8   :  { %234 = dma.done.wait [#allocation3], 128  }
   0x9   :  { %235 = vsyncadd [#allocation3], 4294967168 }
   0xa   :  { %236 = dma.done.wait [#allocation6], 128  }
   0xb   :  { %237 = vsyncadd [#allocation6], 4294967168  ;;  %v242_v0 = vmov 0   ;;  %vm48_vm0 = vcmask 130048   ;;  %v92_v1 = vld [vmem:[#allocation5] sm:$0xff]  ;;  %v47_v2 = vld [vmem:[%s294_s1] sm:$0xff]  ;;  %v61_v21 = vlaneseq }
   0xc   :  { %148 = vset.pattern.permute.xlu1 %v242_v0  ;;  %149 = vset.pattern.permute.xlu0 %v242_v0  ;;  %v93_v3 = vsel %vm48_vm0, %v92_v1, -inf  ;;  %v49_v4 = vsel %vm48_vm0, %v47_v2, -inf  ;;  %v73_v5 = vld [vmem:[#allocation2] sm:$0xff]  ;;  %vm111_vm2 = vcmask 7168   ;;  %s131_s29 = sshll.u32 %s297_s4, 4  ;;  %s132_s29 = int_to_ptr.hbm [resolvable:$true] %s131_s29 }
   0xd   :  { %94 = vmax.xlane.f32.xlu1 %v93_v3  ;;  %50 = vmax.xlane.f32.xlu0 %v49_v4  ;;  %v74_v6 = vsel %vm48_vm0, %v73_v5, -inf  ;;  %v46_v7 = vld [vmem:[%s293_s0] sm:$0xff]  ;;  %v62_v24 = vand.u32 127, %v61_v21  ;;  %s243_s0 = smov [#allocation7]  }
   0xe   :  { %s129_s1 = sshll.u32 %s243_s0, 4  ;;  %s130_s1 = int_to_ptr.vmem [resolvable:$true] %s129_s1 }
  0x15   :  { %75 = vmax.xlane.f32.xlu0 %v74_v6 }
  0x26   :  { %64 = vperm.xlu1 %148, %v46_v7  }
  0x80   :  { %v95_v8 = vpop.xlane.xlu1 %94  ;;  %v51_v9 = vpop.xlane.xlu0 %50 }
  0x81   :  { %v96_v10 = vsub.f32 %v92_v1, %v95_v8  ;;  %v52_v11 = vsub.f32 %v47_v2, %v51_v9 }
  0x83   :  { %v97_v12 = vmul.f32 1.442695, %v96_v10  ;;  %v53_v13 = vmul.f32 1.442695, %v52_v11 }
  0x85   :  { %150 = vpow2.f32 %v97_v12 }
  0x86   :  { %152 = vpow2.f32 %v53_v13 }
  0x88   :  { %v76_v14 = vpop.xlane.xlu0 %75 }
  0x89   :  { %v77_v15 = vsub.f32 %v73_v5, %v76_v14 }
  0x8b   :  { %v151_v16 = vpop.eup %150  ;;  %v78_v17 = vmul.f32 1.442695, %v77_v15 }
  0x8c   :  { %v153_v18 = vpop.eup %152  ;;  %v99_v19 = vsel %vm48_vm0, %v151_v16, 0.0 }
  0x8d   :  { %154 = vpow2.f32 %v78_v17  ;;  %100 = vadd.xlane.f32.xlu0 %v99_v19  ;;  %v55_v20 = vsel %vm48_vm0, %v153_v18, 0.0 }
  0x8e   :  { %56 = vadd.xlane.f32.xlu2 %v55_v20 }
  0x93   :  { %v155_v22 = vpop.eup %154 }
  0x94   :  { %v80_v23 = vsel %vm48_vm0, %v155_v22, 0.0 }
  0x96   :  { %81 = vadd.xlane.f32.xlu2 %v80_v23 }
  0x98   :  { %v65_v25 = vpop.permute.xlu1 %64 }
  0x99   :  { %vm66_vm1 = vcmp.eq.s32.totalorder %v62_v24, %v65_v25 }
  0x9a   :  { %v86_v26 = vsel %vm66_vm1, %v73_v5, 0.0  ;;  %v67_v27 = vsel %vm66_vm1, %v47_v2, 0.0  ;;  %v105_v30 = vsel %vm66_vm1, %v92_v1, 0.0 }
  0x9b   :  { %v87_v28 = vsel %vm48_vm0, %v86_v26, 0.0  ;;  %v68_v29 = vsel %vm48_vm0, %v67_v27, 0.0  ;;  %v106_v31 = vsel %vm48_vm0, %v105_v30, 0.0 }
  0x9c   :  { %88 = vadd.xlane.f32.xlu0 %v87_v28 }
  0x9e   :  { %69 = vadd.xlane.f32.xlu2 %v68_v29 }
  0xa6   :  { %107 = vadd.xlane.f32.xlu2 %v106_v31 }
 0x100   :  { %v101_v33 = vpop.xlane.xlu0 %100 }
 0x101   :  { %v57_v32 = vpop.xlane.xlu2 %56 }
 0x102   :  { %156 = vlog2.f32 %v57_v32 }
 0x108   :  { %v157_v35 = vpop.eup %156 }
 0x109   :  { %v82_v34 = vpop.xlane.xlu2 %81  ;;  %v59_v40 = vmul.f32 0.6931472, %v157_v35 }
 0x10a   :  { %158 = vlog2.f32 %v82_v34 }
 0x10b   :  { %160 = vlog2.f32 %v101_v33  ;;  %v60_v45 = vadd.f32 %v59_v40, %v51_v9 }
 0x10f   :  { %v89_v43 = vpop.xlane.xlu0 %88 }
 0x110   :  { %v159_v36 = vpop.eup %158 }
 0x111   :  { %v161_v37 = vpop.eup %160  ;;  %v84_v38 = vmul.f32 0.6931472, %v159_v36  ;;  %v70_v39 = vpop.xlane.xlu2 %69 }
 0x112   :  { %v103_v42 = vmul.f32 0.6931472, %v161_v37  ;;  %v71_v46 = vsub.f32 %v60_v45, %v70_v39 }
 0x113   :  { %v85_v41 = vadd.f32 %v84_v38, %v76_v14 }
 0x114   :  { %v104_v47 = vadd.f32 %v103_v42, %v95_v8 }
 0x115   :  { %v90_v44 = vsub.f32 %v85_v41, %v89_v43 }
 0x117   :  { %v91_v49 = vadd.f32 %v90_v44, %v71_v46 }
 0x119   :  { %v108_v48 = vpop.xlane.xlu2 %107 }
 0x11a   :  { %v109_v50 = vsub.f32 %v104_v47, %v108_v48 }
 0x11c   :  { %v110_v51 = vadd.f32 %v109_v50, %v91_v49 }
 0x11e   :  { %v112_v52 = vsel %vm111_vm2, %v110_v51, 0.0 }
 0x11f   :  { %113 = vadd.xlane.f32.xlu0 %v112_v52 }
 0x192   :  { %v114_v53 = vpop.xlane.xlu0 %113 }
 0x193   :  { %v115_v54 = vrot.slane %v114_v53, 4 }
 0x195   :  { %v116_v55 = vadd.f32 %v115_v54, %v114_v53 }
 0x197   :  { %v117_v56 = vrot.slane %v116_v55, 2 }
 0x199   :  { %v118_v57 = vadd.f32 %v117_v56, %v116_v55 }
 0x19b   :  { %v119_v58 = vrot.slane %v118_v57, 1 }
 0x19d   :  { %v120_v59 = vadd.f32 %v119_v58, %v118_v57 }
 0x19f   :  { %142 = vpush %v120_v59 }
 0x1d0   :  { %s143_s30 = spop %142 }
 0x1d1   :  { %v122_v60 = vstv %s143_s30 }
 0x1d2   :  { %123 = vst [vmem:[#allocation7] sm:$0xff] %v122_v60 }
 0x1d3   :  { %134 = dma.vmem_to_hbm [thread:$0]  %s130_s1, 128, %s132_s29, [#allocation4]  }
 0x1d4   :  { %238 = dma.done.wait [#allocation4], 128  }
 0x1d5   :  { %239 = vsyncadd [#allocation4], 4294967168 }
 0x1d6   :  { %139 = vsyncpa [#allocation3], 1 }
 0x1d7   :  { %140 = vsyncpa [#allocation6], 1 }
 0x1d8   :  { %141 = vsyncpa [#allocation4], 1 }

</bundles_post_ra>
